<compile_context>
chip_gen: v5e
topology: v5e:2x2
jax: 0.10.0
libtpu: 0.0.40
codegen_flags: <defaults>
</compile_context>

<pallas_src>
import functools

import jax
import jax.numpy as jnp
from jax import lax
from jax.experimental import pallas as pl
from jax.experimental.pallas import tpu as pltpu

LN_EPS = 1e-5   # torch.nn.LayerNorm default eps
BN_EPS = 1e-5   # torch.nn.BatchNorm1d default eps


def _round_up(x, m):
    return ((x + m - 1) // m) * m


def _layernorm(x, gamma, beta):
    # LayerNorm over last dim, biased variance, eps inside rsqrt (matches torch).
    mean = jnp.mean(x, axis=-1, keepdims=True)
    var = jnp.mean(jnp.square(x - mean), axis=-1, keepdims=True)
    return (x - mean) * lax.rsqrt(var + LN_EPS) * gamma + beta


def _sigmoid(x):
    # logistic via tanh: one EUP op + one FMA (cheaper than exp + exact f32 divide).
    return 0.5 * jnp.tanh(0.5 * x) + 0.5


def _dot(a, b):
    # MXU-friendly: bf16 operands, f32 accumulation. Safe on v5e/v6e/v7x MXUs.
    return jnp.dot(a.astype(jnp.bfloat16), b.astype(jnp.bfloat16),
                   preferred_element_type=jnp.float32)


def reward_lstm_kernel(
    ns_ref,                                # [TB, H]     bf16 next_state tile
    h0_ref, c0_ref,                        # [TB, L]     bf16 h0 tile / f32 c0 tile
    prow_ref,                              # [1, total]  f32 packed 1-row params
    rb_w1_ref, rb_w2_ref,                  # [H, H]      bf16 resblock weights
    w_ih_ref, w_hh_ref,                    # [H, 4*Lp], [L, 4*Lp] bf16 gate-padded
    *rest,                                 # mlp weights ..., then the packed out ref
    layout, mlp_bias_slices, lstm_hidden, lstm_hidden_pad, h_off, c_off,
):
    n_mlp = len(mlp_bias_slices)
    mlp_w_refs = rest[:n_mlp]
    out_ref = rest[n_mlp]
    L, Lp = lstm_hidden, lstm_hidden_pad
    f32 = jnp.float32

    def row(name):
        off, width = layout[name]
        return prow_ref[:, off:off + width]          # static 128-aligned view

    x = ns_ref[...].astype(f32)

    # --- ImproveResidualBlock: LN -> Linear -> ReLU -> Linear -> + identity
    identity = x
    h = _layernorm(x, row("rb_ln_w"), row("rb_ln_b"))
    h = jnp.maximum(_dot(h, rb_w1_ref[...]) + row("rb_b1"), 0.0)
    h = _dot(h, rb_w2_ref[...]) + row("rb_b2")
    x = identity + h

    # --- LayerNorm before the LSTM
    x = _layernorm(x, row("ln_w"), row("ln_b"))

    # --- single-step LSTM; PyTorch gate order i, f, g, o.  The gate axis is padded to
    #     4*Lp so each gate's columns start on a 128-lane boundary: aligned free slices.
    h_prev = h0_ref[...].astype(f32)
    c_prev = c0_ref[...].astype(f32)
    gates = _dot(x, w_ih_ref[...]) + _dot(h_prev, w_hh_ref[...]) + row("lstm_b")
    i_g = _sigmoid(gates[:, 0 * Lp:0 * Lp + L])
    f_g = _sigmoid(gates[:, 1 * Lp:1 * Lp + L])
    g_g = jnp.tanh(gates[:, 2 * Lp:2 * Lp + L])
    o_g = _sigmoid(gates[:, 3 * Lp:3 * Lp + L])
    c_new = f_g * c_prev + i_g * g_g
    h_new = o_g * jnp.tanh(c_new)

    # --- reward MLP head (eval-mode BatchNorm1d already folded into the Linears);
    #     the final Linear's output columns are pre-padded to a 128 multiple.
    r = h_new
    for idx in range(n_mlp):
        off, width = mlp_bias_slices[idx]
        r = _dot(r, mlp_w_refs[idx][...]) + prow_ref[:, off:off + width]
        if idx < n_mlp - 1:
            r = jnp.maximum(r, 0.0)

    # --- single lane-dense packed output slab: [ reward(Sp) | h'(L) | c'(L) | pad ].
    #     Unwritten pad lanes are never read by the wrapper.
    out_ref[:, 0:r.shape[-1]] = r
    out_ref[:, h_off:h_off + L] = h_new
    out_ref[:, c_off:c_off + L] = c_new


def prepare_params(params):
    """One-time (model-load) param prep.

    Transposes to [in, out], folds eval-mode BN into the preceding Linear, pads the LSTM
    gate axis so each gate starts on a 128-lane boundary, pads the head output to a 128
    multiple, packs every 1-row param into one [1, total] f32 slab and casts matmul
    weights to bf16. Run ONCE at model load, not per forward call.
    """
    f32, bf16 = jnp.float32, jnp.bfloat16
    H = params["rb_w1"].shape[1]
    L = params["lstm_w_hh"].shape[1]
    S = params["out_w"].shape[0]
    Lp = _round_up(L, 128)
    Sp = _round_up(S, 128)
    h_off = Sp
    c_off = h_off + L if 2 * L <= Lp else h_off + Lp
    P_out = _round_up(c_off + L, 128)

    # --- matmul weights ([in, out], bf16) -------------------------------------------
    rb_w1 = params["rb_w1"].T.astype(bf16)                      # [H, H]
    rb_w2 = params["rb_w2"].T.astype(bf16)                      # [H, H]

    # LSTM: pad the 4L gate axis so gate k occupies columns [k*Lp, k*Lp + L).
    w_ih_t = params["lstm_w_ih"].T.astype(f32)                  # [H, 4L]
    w_hh_t = params["lstm_w_hh"].T.astype(f32)                  # [L, 4L]
    b_lstm = (params["lstm_b_ih"] + params["lstm_b_hh"]).astype(f32)
    w_ih_p = jnp.zeros((H, 4 * Lp), f32)
    w_hh_p = jnp.zeros((L, 4 * Lp), f32)
    b_lstm_p = jnp.zeros((4 * Lp,), f32)
    for k in range(4):
        w_ih_p = w_ih_p.at[:, k * Lp:k * Lp + L].set(w_ih_t[:, k * L:(k + 1) * L])
        w_hh_p = w_hh_p.at[:, k * Lp:k * Lp + L].set(w_hh_t[:, k * L:(k + 1) * L])
        b_lstm_p = b_lstm_p.at[k * Lp:k * Lp + L].set(b_lstm[k * L:(k + 1) * L])

    # reward MLP head: fold eval-mode BN into each hidden Linear; pad the final Linear's
    # output columns to Sp so the head result is already lane-dense for the output slab.
    mlp_ws, mlp_bias_vecs = [], []
    for i in range(len(params["mlp_w"])):
        w, b = params["mlp_w"][i], params["mlp_b"][i]            # [out, in], [out]
        scale = params["bn_w"][i] * lax.rsqrt(params["bn_var"][i] + BN_EPS)
        mlp_ws.append((w * scale[:, None]).T.astype(bf16))       # [in, out]
        mlp_bias_vecs.append(
            ((b - params["bn_mean"][i]) * scale + params["bn_b"][i]).astype(f32))
    out_w = jnp.zeros((params["out_w"].shape[1], Sp), f32)
    out_w = out_w.at[:, :S].set(params["out_w"].T).astype(bf16)
    out_b = jnp.zeros((Sp,), f32).at[:S].set(params["out_b"])
    mlp_ws.append(out_w)
    mlp_bias_vecs.append(out_b)

    # --- pack every 1-row param into one slab (each piece at a 128-aligned offset) ---
    pieces = [
        ("rb_ln_w", params["rb_ln_w"]), ("rb_ln_b", params["rb_ln_b"]),
        ("rb_b1", params["rb_b1"]), ("rb_b2", params["rb_b2"]),
        ("ln_w", params["ln_w"]), ("ln_b", params["ln_b"]),
        ("lstm_b", b_lstm_p),
    ]
    for i, b in enumerate(mlp_bias_vecs):
        pieces.append((f"mlp_b_{i}", b))

    layout, cols, off = {}, [], 0
    for name, vec in pieces:
        vec = vec.astype(f32)
        width = int(vec.shape[0])
        wpad = _round_up(width, 128)
        cols.append(jnp.zeros((wpad,), f32).at[:width].set(vec))
        layout[name] = (off, width)
        off += wpad
    prow = jnp.concatenate(cols)[None, :]                        # [1, total]

    mlp_bias_slices = tuple(layout[f"mlp_b_{i}"] for i in range(len(mlp_bias_vecs)))

    return {
        "prow": prow,
        "rb_w1": rb_w1, "rb_w2": rb_w2,
        "w_ih": w_ih_p.astype(bf16), "w_hh": w_hh_p.astype(bf16),
        "mlp_ws": tuple(mlp_ws),
        "layout": layout, "mlp_bias_slices": mlp_bias_slices,
        "dims": dict(H=H, L=L, Lp=Lp, S=S, Sp=Sp,
                     h_off=h_off, c_off=c_off, P_out=P_out),
    }


def reward_network_lstm(next_state, hidden, prepped, *, batch_tile=512):
    """Forward pass. `prepped` must come from prepare_params() (run once at load)."""
    h0, c0 = hidden
    if h0.ndim == 3:                       # torch nn.LSTM hidden layout [1, B, L]
        h0, c0 = h0[0], c0[0]

    d = prepped["dims"]
    H, L, S = d["H"], d["L"], d["S"]
    P_out, h_off, c_off = d["P_out"], d["h_off"], d["c_off"]
    B = next_state.shape[0]
    f32, bf16 = jnp.float32, jnp.bfloat16

    ins = (next_state.astype(bf16),        # bf16 activation DMA (half the HBM bytes)
           h0.astype(bf16),
           c0.astype(f32),                 # keep the cell state in f32
           prepped["prow"], prepped["rb_w1"], prepped["rb_w2"],
           prepped["w_ih"], prepped["w_hh"], *prepped["mlp_ws"])

    # Batch tile: as large as comfortable, but split big batches into >= 2 grid steps so
    # both v7x TensorCores get work; keep tiles 16-row aligned for the bf16 inputs.
    # (On v6e, batch_tile can be swept up to 1024-2048; on v5e prefer <= 256.)
    TB = min(batch_tile, B)
    if B > 16:
        TB = min(TB, _round_up(pl.cdiv(B, 2), 16))
        TB = _round_up(TB, 16)
    grid = (pl.cdiv(B, TB),)

    def act_spec(dim):
        return pl.BlockSpec((TB, dim), lambda i: (i, 0))

    def full_spec(arr):
        nd = arr.ndim
        return pl.BlockSpec(arr.shape, lambda i: (0,) * nd)

    in_specs = [act_spec(H), act_spec(L), act_spec(L)] + [full_spec(a) for a in ins[3:]]

    kernel = functools.partial(
        reward_lstm_kernel,
        layout=prepped["layout"], mlp_bias_slices=prepped["mlp_bias_slices"],
        lstm_hidden=L, lstm_hidden_pad=d["Lp"], h_off=h_off, c_off=c_off)

    out = pl.pallas_call(
        kernel,
        out_shape=jax.ShapeDtypeStruct((B, P_out), f32),
        grid=grid,
        in_specs=in_specs,
        out_specs=act_spec(P_out),
        compiler_params=pltpu.CompilerParams(dimension_semantics=("parallel",)),
    )(*ins)

    reward = out[:, :S]
    h_new = out[:, h_off:h_off + L]
    c_new = out[:, c_off:c_off + L]
    return reward, (h_new[None], c_new[None])


def _sigmoid_exact(x):
    return 1.0 / (1.0 + jnp.exp(-x))


def reference_forward(next_state, hidden, params, *, match_kernel=False):
    """Pure-JAX reference mirroring the PyTorch module (eval mode).

    match_kernel=True mirrors the kernel numerics (bf16 activation inputs, bf16 matmul
    operands with f32 accumulation, BN folded into the Linears, tanh-form sigmoid) for a
    tight numerical comparison.
    """
    h0, c0 = hidden
    if h0.ndim == 3:
        h0, c0 = h0[0], c0[0]
    f32, bf16 = jnp.float32, jnp.bfloat16

    def q(a):
        return a.astype(bf16).astype(f32) if match_kernel else a

    def mm(a, w_torch):                      # a [B, in], torch weight [out, in]
        if match_kernel:
            return jnp.dot(a.astype(bf16), w_torch.T.astype(bf16),
                           preferred_element_type=f32)
        return a @ w_torch.T

    sig = (lambda v: 0.5 * jnp.tanh(0.5 * v) + 0.5) if match_kernel else _sigmoid_exact

    x = q(next_state)
    h0q = q(h0)

    identity = x
    h = _layernorm(x, params["rb_ln_w"], params["rb_ln_b"])
    h = jnp.maximum(mm(h, params["rb_w1"]) + params["rb_b1"], 0.0)
    h = mm(h, params["rb_w2"]) + params["rb_b2"]
    x = identity + h

    x = _layernorm(x, params["ln_w"], params["ln_b"])

    gates = (mm(x, params["lstm_w_ih"]) + params["lstm_b_ih"]
             + mm(h0q, params["lstm_w_hh"]) + params["lstm_b_hh"])
    L = h0.shape[-1]
    i_g = sig(gates[:, 0:L])
    f_g = sig(gates[:, L:2 * L])
    g_g = jnp.tanh(gates[:, 2 * L:3 * L])
    o_g = sig(gates[:, 3 * L:4 * L])
    c_new = f_g * c0 + i_g * g_g
    h_new = o_g * jnp.tanh(c_new)

    r = h_new
    for i in range(len(params["mlp_w"])):
        if match_kernel:
            scale = params["bn_w"][i] * lax.rsqrt(params["bn_var"][i] + BN_EPS)
            w_f = params["mlp_w"][i] * scale[:, None]
            b_f = (params["mlp_b"][i] - params["bn_mean"][i]) * scale + params["bn_b"][i]
            r = mm(r, w_f) + b_f
        else:
            r = mm(r, params["mlp_w"][i]) + params["mlp_b"][i]
            r = ((r - params["bn_mean"][i]) * lax.rsqrt(params["bn_var"][i] + BN_EPS)
                 * params["bn_w"][i] + params["bn_b"][i])
        r = jnp.maximum(r, 0.0)
    r = mm(r, params["out_w"]) + params["out_b"]
    return r, (h_new[None], c_new[None])


def init_params(key, hidden_shape, rew_net_shape, reward_support_size, lstm_hidden):
    ks = iter(jax.random.split(key, 32))
    f32 = jnp.float32
    H, L, S = hidden_shape, lstm_hidden, reward_support_size

    def lin(k, out_dim, in_dim, scale=0.05):
        kw, kb = jax.random.split(k)
        return (scale * jax.random.normal(kw, (out_dim, in_dim), f32),
                0.01 * jax.random.normal(kb, (out_dim,), f32))

    rb_w1, rb_b1 = lin(next(ks), H, H)
    rb_w2, rb_b2 = lin(next(ks), H, H)

    lstm_w_ih = 0.05 * jax.random.normal(next(ks), (4 * L, H), f32)
    lstm_w_hh = 0.05 * jax.random.normal(next(ks), (4 * L, L), f32)
    lstm_b_ih = 0.01 * jax.random.normal(next(ks), (4 * L,), f32)
    lstm_b_hh = 0.01 * jax.random.normal(next(ks), (4 * L,), f32)

    sizes = [L] + list(rew_net_shape)
    mlp_w, mlp_b, bn_w, bn_b, bn_mean, bn_var = [], [], [], [], [], []
    for i in range(len(rew_net_shape)):
        w, b = lin(next(ks), sizes[i + 1], sizes[i], scale=0.1)
        mlp_w.append(w)
        mlp_b.append(b)
        bn_w.append(1.0 + 0.1 * jax.random.normal(next(ks), (sizes[i + 1],), f32))
        bn_b.append(0.05 * jax.random.normal(next(ks), (sizes[i + 1],), f32))
        bn_mean.append(0.1 * jax.random.normal(next(ks), (sizes[i + 1],), f32))
        bn_var.append(1.0 + 0.2 * jax.random.uniform(next(ks), (sizes[i + 1],), f32))
    out_w, out_b = lin(next(ks), S, sizes[-1], scale=0.1)

    return {
        "rb_ln_w": jnp.ones((H,), f32), "rb_ln_b": jnp.zeros((H,), f32),
        "rb_w1": rb_w1, "rb_b1": rb_b1, "rb_w2": rb_w2, "rb_b2": rb_b2,
        "ln_w": jnp.ones((H,), f32), "ln_b": jnp.zeros((H,), f32),
        "lstm_w_ih": lstm_w_ih, "lstm_w_hh": lstm_w_hh,
        "lstm_b_ih": lstm_b_ih, "lstm_b_hh": lstm_b_hh,
        "mlp_w": mlp_w, "mlp_b": mlp_b,
        "bn_w": bn_w, "bn_b": bn_b, "bn_mean": bn_mean, "bn_var": bn_var,
        "out_w": out_w, "out_b": out_b,
    }


if __name__ == "__main__":
    # Small config: hidden_shape=32, rew_net_shape=[64], reward_support_size=21,
    # lstm_hidden_size=32, batch=8.
    hidden_shape = 32
    rew_net_shape = [64]
    reward_support_size = 21
    lstm_hidden_size = 32
    batch = 8

    key = jax.random.PRNGKey(0)
    k_x, k_h, k_c, k_p = jax.random.split(key, 4)
    next_state = jax.random.normal(k_x, (batch, hidden_shape), jnp.float32)
    h0 = 0.1 * jax.random.normal(k_h, (1, batch, lstm_hidden_size), jnp.float32)
    c0 = 0.1 * jax.random.normal(k_c, (1, batch, lstm_hidden_size), jnp.float32)
    params = init_params(k_p, hidden_shape, rew_net_shape,
                         reward_support_size, lstm_hidden_size)

    prepped = prepare_params(params)        # one-time, at model load
    reward, (h_new, c_new) = reward_network_lstm(next_state, (h0, c0), prepped)
    reward = jax.block_until_ready(reward)
    h_new = jax.block_until_ready(h_new)
    c_new = jax.block_until_ready(c_new)

    assert reward.shape == (batch, reward_support_size)
    assert h_new.shape == (1, batch, lstm_hidden_size)
    assert c_new.shape == (1, batch, lstm_hidden_size)

    # Tight check vs. a reference that mirrors the kernel's numerics (bf16 in / f32 acc,
    # folded BN, tanh-form sigmoid).
    r_q, (h_q, c_q) = reference_forward(next_state, (h0, c0), params, match_kernel=True)
    assert jnp.allclose(reward, r_q, atol=1e-3, rtol=1e-3), float(jnp.max(jnp.abs(reward - r_q)))
    assert jnp.allclose(h_new, h_q, atol=1e-3, rtol=1e-3), float(jnp.max(jnp.abs(h_new - h_q)))
    assert jnp.allclose(c_new, c_q, atol=1e-3, rtol=1e-3), float(jnp.max(jnp.abs(c_new - c_q)))

    # Looser check vs. the pure-f32 (torch-faithful, unfused-BN, exact-sigmoid) reference.
    r_f, (h_f, c_f) = reference_forward(next_state, (h0, c0), params, match_kernel=False)
    assert jnp.allclose(reward, r_f, atol=2e-2, rtol=2e-2), float(jnp.max(jnp.abs(reward - r_f)))
    assert jnp.allclose(h_new, h_f, atol=2e-2, rtol=2e-2), float(jnp.max(jnp.abs(h_new - h_f)))
    assert jnp.allclose(c_new, c_f, atol=2e-2, rtol=2e-2), float(jnp.max(jnp.abs(c_new - c_f)))

    print("KERNEL_OK")
</pallas_src>

<mosaic_0001>
module attributes {stable_mosaic.version = 11 : i64} {
  func.func @reward_lstm_kernel(%arg0: i32, %arg1: memref<8x32xbf16, #tpu.memory_space<vmem>>, %arg2: memref<8x32xbf16, #tpu.memory_space<vmem>>, %arg3: memref<8x32xf32, #tpu.memory_space<vmem>>, %arg4: memref<1x1536xf32, #tpu.memory_space<vmem>>, %arg5: memref<32x32xbf16, #tpu.memory_space<vmem>>, %arg6: memref<32x32xbf16, #tpu.memory_space<vmem>>, %arg7: memref<32x512xbf16, #tpu.memory_space<vmem>>, %arg8: memref<32x512xbf16, #tpu.memory_space<vmem>>, %arg9: memref<32x64xbf16, #tpu.memory_space<vmem>>, %arg10: memref<64x128xbf16, #tpu.memory_space<vmem>>, %arg11: memref<8x256xf32, #tpu.memory_space<vmem>>) attributes {dimension_semantics = [#tpu.dimension_semantics<parallel>], iteration_bounds = array<i64: 1>, scalar_prefetch = 0 : i64, scratch_operands = 0 : i64, tpu.core_type = #tpu.core_type<tc>, window_params = [{transform_indices = @transform_0, window_bounds = array<i64: 8, 32>}, {transform_indices = @transform_1, window_bounds = array<i64: 8, 32>}, {transform_indices = @transform_2, window_bounds = array<i64: 8, 32>}, {pipeline_mode = #tpu.pipeline_mode<synchronous>, transform_indices = @transform_3, window_bounds = array<i64: 1, 1536>}, {pipeline_mode = #tpu.pipeline_mode<synchronous>, transform_indices = @transform_4, window_bounds = array<i64: 32, 32>}, {pipeline_mode = #tpu.pipeline_mode<synchronous>, transform_indices = @transform_5, window_bounds = array<i64: 32, 32>}, {pipeline_mode = #tpu.pipeline_mode<synchronous>, transform_indices = @transform_6, window_bounds = array<i64: 32, 512>}, {pipeline_mode = #tpu.pipeline_mode<synchronous>, transform_indices = @transform_7, window_bounds = array<i64: 32, 512>}, {pipeline_mode = #tpu.pipeline_mode<synchronous>, transform_indices = @transform_8, window_bounds = array<i64: 32, 64>}, {pipeline_mode = #tpu.pipeline_mode<synchronous>, transform_indices = @transform_9, window_bounds = array<i64: 64, 128>}, {transform_indices = @transform_10, window_bounds = array<i64: 8, 256>}]} {
    %c0 = arith.constant 0 : index
    %c0_0 = arith.constant 0 : index
    %0 = vector.load %arg1[%c0, %c0_0] : memref<8x32xbf16, #tpu.memory_space<vmem>>, vector<8x32xbf16>
    %1 = arith.extf %0 : vector<8x32xbf16> to vector<8x32xf32>
    %c0_1 = arith.constant 0 : index
    %c0_2 = arith.constant 0 : index
    %2 = vector.load %arg4[%c0_1, %c0_2] : memref<1x1536xf32, #tpu.memory_space<vmem>>, vector<1x32xf32>
    %c0_3 = arith.constant 0 : index
    %c128 = arith.constant 128 : index
    %3 = vector.load %arg4[%c0_3, %c128] : memref<1x1536xf32, #tpu.memory_space<vmem>>, vector<1x32xf32>
    %cst = arith.constant dense<0.000000e+00> : vector<8xf32>
    %4 = vector.multi_reduction <add>, %1, %cst [1] : vector<8x32xf32> to vector<8xf32>
    %5 = vector.shape_cast %4 : vector<8xf32> to vector<8x1xf32>
    %cst_4 = arith.constant 3.200000e+01 : f32
    %6 = vector.broadcast %cst_4 : f32 to vector<8x1xf32>
    %7 = arith.divf %5, %6 : vector<8x1xf32>
    %8 = vector.broadcast %7 : vector<8x1xf32> to vector<8x32xf32>
    %9 = arith.subf %1, %8 : vector<8x32xf32>
    %10 = arith.mulf %9, %9 : vector<8x32xf32>
    %cst_5 = arith.constant dense<0.000000e+00> : vector<8xf32>
    %11 = vector.multi_reduction <add>, %10, %cst_5 [1] : vector<8x32xf32> to vector<8xf32>
    %12 = vector.shape_cast %11 : vector<8xf32> to vector<8x1xf32>
    %cst_6 = arith.constant 3.200000e+01 : f32
    %13 = vector.broadcast %cst_6 : f32 to vector<8x1xf32>
    %14 = arith.divf %12, %13 : vector<8x1xf32>
    %15 = vector.broadcast %7 : vector<8x1xf32> to vector<8x32xf32>
    %16 = arith.subf %1, %15 : vector<8x32xf32>
    %cst_7 = arith.constant 9.99999974E-6 : f32
    %17 = vector.broadcast %cst_7 : f32 to vector<8x1xf32>
    %18 = arith.addf %14, %17 : vector<8x1xf32>
    %19 = math.rsqrt %18 : vector<8x1xf32>
    %20 = vector.broadcast %19 : vector<8x1xf32> to vector<8x32xf32>
    %21 = arith.mulf %16, %20 : vector<8x32xf32>
    %22 = vector.broadcast %2 : vector<1x32xf32> to vector<8x32xf32>
    %23 = arith.mulf %21, %22 : vector<8x32xf32>
    %24 = vector.broadcast %3 : vector<1x32xf32> to vector<8x32xf32>
    %25 = arith.addf %23, %24 : vector<8x32xf32>
    %c0_8 = arith.constant 0 : index
    %c0_9 = arith.constant 0 : index
    %26 = vector.load %arg5[%c0_8, %c0_9] : memref<32x32xbf16, #tpu.memory_space<vmem>>, vector<32x32xbf16>
    %27 = arith.truncf %25 : vector<8x32xf32> to vector<8x32xbf16>
    %cst_10 = arith.constant dense<0.000000e+00> : vector<8x32xf32>
    %28 = tpu.matmul %27, %26, %cst_10 {dimension_numbers = #tpu.dot_dimension_numbers<[1], [0], [0], [1], [0, 0, 1, 1], [], []>} : vector<8x32xbf16>, vector<32x32xbf16>, vector<8x32xf32> -> vector<8x32xf32>
    %c0_11 = arith.constant 0 : index
    %c256 = arith.constant 256 : index
    %29 = vector.load %arg4[%c0_11, %c256] : memref<1x1536xf32, #tpu.memory_space<vmem>>, vector<1x32xf32>
    %30 = vector.broadcast %29 : vector<1x32xf32> to vector<8x32xf32>
    %31 = arith.addf %28, %30 : vector<8x32xf32>
    %cst_12 = arith.constant 0.000000e+00 : f32
    %32 = vector.broadcast %cst_12 : f32 to vector<8x32xf32>
    %33 = arith.maximumf %31, %32 : vector<8x32xf32>
    %c0_13 = arith.constant 0 : index
    %c0_14 = arith.constant 0 : index
    %34 = vector.load %arg6[%c0_13, %c0_14] : memref<32x32xbf16, #tpu.memory_space<vmem>>, vector<32x32xbf16>
    %35 = arith.truncf %33 : vector<8x32xf32> to vector<8x32xbf16>
    %cst_15 = arith.constant dense<0.000000e+00> : vector<8x32xf32>
    %36 = tpu.matmul %35, %34, %cst_15 {dimension_numbers = #tpu.dot_dimension_numbers<[1], [0], [0], [1], [0, 0, 1, 1], [], []>} : vector<8x32xbf16>, vector<32x32xbf16>, vector<8x32xf32> -> vector<8x32xf32>
    %c0_16 = arith.constant 0 : index
    %c384 = arith.constant 384 : index
    %37 = vector.load %arg4[%c0_16, %c384] : memref<1x1536xf32, #tpu.memory_space<vmem>>, vector<1x32xf32>
    %38 = vector.broadcast %37 : vector<1x32xf32> to vector<8x32xf32>
    %39 = arith.addf %36, %38 : vector<8x32xf32>
    %40 = arith.addf %1, %39 : vector<8x32xf32>
    %c0_17 = arith.constant 0 : index
    %c512 = arith.constant 512 : index
    %41 = vector.load %arg4[%c0_17, %c512] : memref<1x1536xf32, #tpu.memory_space<vmem>>, vector<1x32xf32>
    %c0_18 = arith.constant 0 : index
    %c640 = arith.constant 640 : index
    %42 = vector.load %arg4[%c0_18, %c640] : memref<1x1536xf32, #tpu.memory_space<vmem>>, vector<1x32xf32>
    %cst_19 = arith.constant dense<0.000000e+00> : vector<8xf32>
    %43 = vector.multi_reduction <add>, %40, %cst_19 [1] : vector<8x32xf32> to vector<8xf32>
    %44 = vector.shape_cast %43 : vector<8xf32> to vector<8x1xf32>
    %cst_20 = arith.constant 3.200000e+01 : f32
    %45 = vector.broadcast %cst_20 : f32 to vector<8x1xf32>
    %46 = arith.divf %44, %45 : vector<8x1xf32>
    %47 = vector.broadcast %46 : vector<8x1xf32> to vector<8x32xf32>
    %48 = arith.subf %40, %47 : vector<8x32xf32>
    %49 = arith.mulf %48, %48 : vector<8x32xf32>
    %cst_21 = arith.constant dense<0.000000e+00> : vector<8xf32>
    %50 = vector.multi_reduction <add>, %49, %cst_21 [1] : vector<8x32xf32> to vector<8xf32>
    %51 = vector.shape_cast %50 : vector<8xf32> to vector<8x1xf32>
    %cst_22 = arith.constant 3.200000e+01 : f32
    %52 = vector.broadcast %cst_22 : f32 to vector<8x1xf32>
    %53 = arith.divf %51, %52 : vector<8x1xf32>
    %54 = vector.broadcast %46 : vector<8x1xf32> to vector<8x32xf32>
    %55 = arith.subf %40, %54 : vector<8x32xf32>
    %cst_23 = arith.constant 9.99999974E-6 : f32
    %56 = vector.broadcast %cst_23 : f32 to vector<8x1xf32>
    %57 = arith.addf %53, %56 : vector<8x1xf32>
    %58 = math.rsqrt %57 : vector<8x1xf32>
    %59 = vector.broadcast %58 : vector<8x1xf32> to vector<8x32xf32>
    %60 = arith.mulf %55, %59 : vector<8x32xf32>
    %61 = vector.broadcast %41 : vector<1x32xf32> to vector<8x32xf32>
    %62 = arith.mulf %60, %61 : vector<8x32xf32>
    %63 = vector.broadcast %42 : vector<1x32xf32> to vector<8x32xf32>
    %64 = arith.addf %62, %63 : vector<8x32xf32>
    %c0_24 = arith.constant 0 : index
    %c0_25 = arith.constant 0 : index
    %65 = vector.load %arg2[%c0_24, %c0_25] : memref<8x32xbf16, #tpu.memory_space<vmem>>, vector<8x32xbf16>
    %66 = arith.extf %65 : vector<8x32xbf16> to vector<8x32xf32>
    %c0_26 = arith.constant 0 : index
    %c0_27 = arith.constant 0 : index
    %67 = vector.load %arg3[%c0_26, %c0_27] : memref<8x32xf32, #tpu.memory_space<vmem>>, vector<8x32xf32>
    %c0_28 = arith.constant 0 : index
    %c0_29 = arith.constant 0 : index
    %68 = vector.load %arg7[%c0_28, %c0_29] : memref<32x512xbf16, #tpu.memory_space<vmem>>, vector<32x512xbf16>
    %69 = arith.truncf %64 : vector<8x32xf32> to vector<8x32xbf16>
    %cst_30 = arith.constant dense<0.000000e+00> : vector<8x512xf32>
    %70 = tpu.matmul %69, %68, %cst_30 {dimension_numbers = #tpu.dot_dimension_numbers<[1], [0], [0], [1], [0, 0, 1, 1], [], []>} : vector<8x32xbf16>, vector<32x512xbf16>, vector<8x512xf32> -> vector<8x512xf32>
    %c0_31 = arith.constant 0 : index
    %c0_32 = arith.constant 0 : index
    %71 = vector.load %arg8[%c0_31, %c0_32] : memref<32x512xbf16, #tpu.memory_space<vmem>>, vector<32x512xbf16>
    %72 = arith.truncf %66 : vector<8x32xf32> to vector<8x32xbf16>
    %cst_33 = arith.constant dense<0.000000e+00> : vector<8x512xf32>
    %73 = tpu.matmul %72, %71, %cst_33 {dimension_numbers = #tpu.dot_dimension_numbers<[1], [0], [0], [1], [0, 0, 1, 1], [], []>} : vector<8x32xbf16>, vector<32x512xbf16>, vector<8x512xf32> -> vector<8x512xf32>
    %74 = arith.addf %70, %73 : vector<8x512xf32>
    %c0_34 = arith.constant 0 : index
    %c768 = arith.constant 768 : index
    %75 = vector.load %arg4[%c0_34, %c768] : memref<1x1536xf32, #tpu.memory_space<vmem>>, vector<1x512xf32>
    %76 = vector.broadcast %75 : vector<1x512xf32> to vector<8x512xf32>
    %77 = arith.addf %74, %76 : vector<8x512xf32>
    %78 = vector.extract_strided_slice %77 {offsets = [0, 0], sizes = [8, 32], strides = [1, 1]} : vector<8x512xf32> to vector<8x32xf32>
    %cst_35 = arith.constant 5.000000e-01 : f32
    %79 = vector.broadcast %cst_35 : f32 to vector<8x32xf32>
    %80 = arith.mulf %79, %78 : vector<8x32xf32>
    %81 = math.tanh %80 : vector<8x32xf32>
    %cst_36 = arith.constant 5.000000e-01 : f32
    %82 = vector.broadcast %cst_36 : f32 to vector<8x32xf32>
    %83 = arith.mulf %82, %81 : vector<8x32xf32>
    %cst_37 = arith.constant 5.000000e-01 : f32
    %84 = vector.broadcast %cst_37 : f32 to vector<8x32xf32>
    %85 = arith.addf %83, %84 : vector<8x32xf32>
    %86 = vector.extract_strided_slice %77 {offsets = [0, 128], sizes = [8, 32], strides = [1, 1]} : vector<8x512xf32> to vector<8x32xf32>
    %cst_38 = arith.constant 5.000000e-01 : f32
    %87 = vector.broadcast %cst_38 : f32 to vector<8x32xf32>
    %88 = arith.mulf %87, %86 : vector<8x32xf32>
    %89 = math.tanh %88 : vector<8x32xf32>
    %cst_39 = arith.constant 5.000000e-01 : f32
    %90 = vector.broadcast %cst_39 : f32 to vector<8x32xf32>
    %91 = arith.mulf %90, %89 : vector<8x32xf32>
    %cst_40 = arith.constant 5.000000e-01 : f32
    %92 = vector.broadcast %cst_40 : f32 to vector<8x32xf32>
    %93 = arith.addf %91, %92 : vector<8x32xf32>
    %94 = vector.extract_strided_slice %77 {offsets = [0, 256], sizes = [8, 32], strides = [1, 1]} : vector<8x512xf32> to vector<8x32xf32>
    %95 = math.tanh %94 : vector<8x32xf32>
    %96 = vector.extract_strided_slice %77 {offsets = [0, 384], sizes = [8, 32], strides = [1, 1]} : vector<8x512xf32> to vector<8x32xf32>
    %cst_41 = arith.constant 5.000000e-01 : f32
    %97 = vector.broadcast %cst_41 : f32 to vector<8x32xf32>
    %98 = arith.mulf %97, %96 : vector<8x32xf32>
    %99 = math.tanh %98 : vector<8x32xf32>
    %cst_42 = arith.constant 5.000000e-01 : f32
    %100 = vector.broadcast %cst_42 : f32 to vector<8x32xf32>
    %101 = arith.mulf %100, %99 : vector<8x32xf32>
    %cst_43 = arith.constant 5.000000e-01 : f32
    %102 = vector.broadcast %cst_43 : f32 to vector<8x32xf32>
    %103 = arith.addf %101, %102 : vector<8x32xf32>
    %104 = arith.mulf %93, %67 : vector<8x32xf32>
    %105 = arith.mulf %85, %95 : vector<8x32xf32>
    %106 = arith.addf %104, %105 : vector<8x32xf32>
    %107 = math.tanh %106 : vector<8x32xf32>
    %108 = arith.mulf %103, %107 : vector<8x32xf32>
    %c0_44 = arith.constant 0 : index
    %c0_45 = arith.constant 0 : index
    %109 = vector.load %arg9[%c0_44, %c0_45] : memref<32x64xbf16, #tpu.memory_space<vmem>>, vector<32x64xbf16>
    %110 = arith.truncf %108 : vector<8x32xf32> to vector<8x32xbf16>
    %cst_46 = arith.constant dense<0.000000e+00> : vector<8x64xf32>
    %111 = tpu.matmul %110, %109, %cst_46 {dimension_numbers = #tpu.dot_dimension_numbers<[1], [0], [0], [1], [0, 0, 1, 1], [], []>} : vector<8x32xbf16>, vector<32x64xbf16>, vector<8x64xf32> -> vector<8x64xf32>
    %c0_47 = arith.constant 0 : index
    %c1280 = arith.constant 1280 : index
    %112 = vector.load %arg4[%c0_47, %c1280] : memref<1x1536xf32, #tpu.memory_space<vmem>>, vector<1x64xf32>
    %113 = vector.broadcast %112 : vector<1x64xf32> to vector<8x64xf32>
    %114 = arith.addf %111, %113 : vector<8x64xf32>
    %cst_48 = arith.constant 0.000000e+00 : f32
    %115 = vector.broadcast %cst_48 : f32 to vector<8x64xf32>
    %116 = arith.maximumf %114, %115 : vector<8x64xf32>
    %c0_49 = arith.constant 0 : index
    %c0_50 = arith.constant 0 : index
    %117 = vector.load %arg10[%c0_49, %c0_50] : memref<64x128xbf16, #tpu.memory_space<vmem>>, vector<64x128xbf16>
    %118 = arith.truncf %116 : vector<8x64xf32> to vector<8x64xbf16>
    %cst_51 = arith.constant dense<0.000000e+00> : vector<8x128xf32>
    %119 = tpu.matmul %118, %117, %cst_51 {dimension_numbers = #tpu.dot_dimension_numbers<[1], [0], [0], [1], [0, 0, 1, 1], [], []>} : vector<8x64xbf16>, vector<64x128xbf16>, vector<8x128xf32> -> vector<8x128xf32>
    %c0_52 = arith.constant 0 : index
    %c1408 = arith.constant 1408 : index
    %120 = vector.load %arg4[%c0_52, %c1408] : memref<1x1536xf32, #tpu.memory_space<vmem>>, vector<1x128xf32>
    %121 = vector.broadcast %120 : vector<1x128xf32> to vector<8x128xf32>
    %122 = arith.addf %119, %121 : vector<8x128xf32>
    %c0_53 = arith.constant 0 : index
    %c0_54 = arith.constant 0 : index
    %123 = vector.load %arg11[%c0_53, %c0_54] : memref<8x256xf32, #tpu.memory_space<vmem>>, vector<8x128xf32>
    tpu.vector_store %arg11[%c0_53, %c0_54], %122 {strides = array<i32>} : memref<8x256xf32, #tpu.memory_space<vmem>>, vector<8x128xf32>,
    %c0_55 = arith.constant 0 : index
    %c128_56 = arith.constant 128 : index
    %124 = vector.load %arg11[%c0_55, %c128_56] : memref<8x256xf32, #tpu.memory_space<vmem>>, vector<8x32xf32>
    tpu.vector_store %arg11[%c0_55, %c128_56], %108 {strides = array<i32>} : memref<8x256xf32, #tpu.memory_space<vmem>>, vector<8x32xf32>,
    %c0_57 = arith.constant 0 : index
    %c160 = arith.constant 160 : index
    %125 = vector.load %arg11[%c0_57, %c160] : memref<8x256xf32, #tpu.memory_space<vmem>>, vector<8x32xf32>
    tpu.vector_store %arg11[%c0_57, %c160], %106 {strides = array<i32>} : memref<8x256xf32, #tpu.memory_space<vmem>>, vector<8x32xf32>,
    return
  }
  func.func @transform_0(%arg0: i32) -> (i32, i32) {
    %c0_i32 = arith.constant 0 : i32
    %c0_i32_0 = arith.constant 0 : i32
    return %arg0, %c0_i32 : i32, i32
  }
  func.func @transform_1(%arg0: i32) -> (i32, i32) {
    %c0_i32 = arith.constant 0 : i32
    %c0_i32_0 = arith.constant 0 : i32
    return %arg0, %c0_i32 : i32, i32
  }
  func.func @transform_2(%arg0: i32) -> (i32, i32) {
    %c0_i32 = arith.constant 0 : i32
    %c0_i32_0 = arith.constant 0 : i32
    return %arg0, %c0_i32 : i32, i32
  }
  func.func @transform_3(%arg0: i32) -> (i32, i32) {
    %c0_i32 = arith.constant 0 : i32
    %c0_i32_0 = arith.constant 0 : i32
    %c0_i32_1 = arith.constant 0 : i32
    return %c0_i32, %c0_i32_0 : i32, i32
  }
  func.func @transform_4(%arg0: i32) -> (i32, i32) {
    %c0_i32 = arith.constant 0 : i32
    %c0_i32_0 = arith.constant 0 : i32
    %c0_i32_1 = arith.constant 0 : i32
    return %c0_i32, %c0_i32_0 : i32, i32
  }
  func.func @transform_5(%arg0: i32) -> (i32, i32) {
    %c0_i32 = arith.constant 0 : i32
    %c0_i32_0 = arith.constant 0 : i32
    %c0_i32_1 = arith.constant 0 : i32
    return %c0_i32, %c0_i32_0 : i32, i32
  }
  func.func @transform_6(%arg0: i32) -> (i32, i32) {
    %c0_i32 = arith.constant 0 : i32
    %c0_i32_0 = arith.constant 0 : i32
    %c0_i32_1 = arith.constant 0 : i32
    return %c0_i32, %c0_i32_0 : i32, i32
  }
  func.func @transform_7(%arg0: i32) -> (i32, i32) {
    %c0_i32 = arith.constant 0 : i32
    %c0_i32_0 = arith.constant 0 : i32
    %c0_i32_1 = arith.constant 0 : i32
    return %c0_i32, %c0_i32_0 : i32, i32
  }
  func.func @transform_8(%arg0: i32) -> (i32, i32) {
    %c0_i32 = arith.constant 0 : i32
    %c0_i32_0 = arith.constant 0 : i32
    %c0_i32_1 = arith.constant 0 : i32
    return %c0_i32, %c0_i32_0 : i32, i32
  }
  func.func @transform_9(%arg0: i32) -> (i32, i32) {
    %c0_i32 = arith.constant 0 : i32
    %c0_i32_0 = arith.constant 0 : i32
    %c0_i32_1 = arith.constant 0 : i32
    return %c0_i32, %c0_i32_0 : i32, i32
  }
  func.func @transform_10(%arg0: i32) -> (i32, i32) {
    %c0_i32 = arith.constant 0 : i32
    %c0_i32_0 = arith.constant 0 : i32
    return %arg0, %c0_i32 : i32, i32
  }
}

</mosaic_0001>

<bundles_post_ra>
// kernel: tpu_custom_call.1
= control target key start
LH: loop header
LB: loop body
LE: loop exit
PB: predicated region body
PF: predicated region fallthrough
CT: control target
= control target key end

     0   :  { %15 = vsyncpa [#allocation3], 0  ;;  %s1303_s0 = inlined_call_operand.hbm [shape: bf16[8,32], index: 0, kind: input, shape index: {}]   ;;  %s1304_s1 = inlined_call_operand.hbm [shape: bf16[8,32], index: 1, kind: input, shape index: {}]   ;;  %s1305_s2 = inlined_call_operand.hbm [shape: f32[8,32], index: 2, kind: input, shape index: {}]   ;;  %s1306_s3 = inlined_call_operand.hbm [shape: f32[1,1536], index: 3, kind: input, shape index: {}]   ;;  %s1307_s4 = inlined_call_operand.hbm [shape: bf16[32,32], index: 4, kind: input, shape index: {}]   ;;  %s1308_s5 = inlined_call_operand.hbm [shape: bf16[32,32], index: 5, kind: input, shape index: {}]   ;;  %s1309_s6 = inlined_call_operand.hbm [shape: bf16[32,512], index: 6, kind: input, shape index: {}]   ;;  %s1310_s7 = inlined_call_operand.hbm [shape: bf16[32,512], index: 7, kind: input, shape index: {}]   ;;  %s1311_s8 = inlined_call_operand.hbm [shape: bf16[32,64], index: 8, kind: input, shape index: {}]   ;;  %s1312_s9 = inlined_call_operand.hbm [shape: bf16[64,128], index: 9, kind: input, shape index: {}]   ;;  %s1313_s10 = inlined_call_operand.hbm [shape: f32[8,256], index: 10, kind: output, shape index: {}]  }
   0x1   :  { %16 = vsyncpa [#allocation6], 0 }
   0x2   :  { %17 = vsyncpa [#allocation9], 0 }
   0x3   :  { %18 = vsyncpa [#allocation12], 0 }
   0x4   :  { %19 = vsyncpa [#allocation15], 0 }
   0x5   :  { %20 = vsyncpa [#allocation18], 0  ;;  %s38_s15 = sshll.u32 %s1304_s1, 4  ;;  %s39_s15 = int_to_ptr.hbm [resolvable:$true] %s38_s15 }
   0x6   :  { %21 = vsyncpa [#allocation4], 0  ;;  %s1159_s16 = smov [#allocation5]   ;;  %s60_s20 = sshll.u32 %s1306_s3, 4  ;;  %s61_s20 = int_to_ptr.hbm [resolvable:$true] %s60_s20 }
   0x7   :  { %s40_s17 = sshll.u32 %s1159_s16, 4  ;;  %s1160_s21 = smov [#allocation8]   ;;  %s41_s17 = int_to_ptr.vmem [resolvable:$true] %s40_s17 }
   0x8   :  { %43 = dma.hbm_to_vmem [thread:$0]  %s39_s15, 64, %s41_s17, [#allocation6]  }
   0x9   :  { %s62_s22 = sshll.u32 %s1160_s21, 4  ;;  %s83_s25 = sshll.u32 %s1308_s5, 4  ;;  %s63_s22 = int_to_ptr.vmem [resolvable:$true] %s62_s22  ;;  %s84_s25 = int_to_ptr.hbm [resolvable:$true] %s83_s25 }
   0xa   :  { %65 = dma.hbm_to_vmem [thread:$0]  %s61_s20, 192, %s63_s22, [#allocation9]  }
   0xb   :  { %s1161_s1 = smov [#allocation11]   ;;  %s1162_s27 = smov 64  }
   0xc   :  { %s85_s26 = sshll.u32 %s1161_s1, 4  ;;  %s1163_s28 = smov 4   ;;  %s86_s26 = int_to_ptr.vmem [resolvable:$true] %s85_s26 }
   0xd   :  { %91 = dma.hbm_to_vmem [thread:$0]  %s84_s25, 256, %s86_s26, [#allocation12], %s1162_s27, %s1162_s27, %s1163_s28  }
   0xe   :  { %s109_s30 = sshll.u32 %s1310_s7, 4  ;;  %s1164_s11 = smov [#allocation14]   ;;  %s110_s30 = int_to_ptr.hbm [resolvable:$true] %s109_s30 }
   0xf   :  { %s111_s12 = sshll.u32 %s1164_s11, 4  ;;  %s27_s5 = sshll.u32 %s1303_s0, 4  ;;  %s112_s12 = int_to_ptr.vmem [resolvable:$true] %s111_s12  ;;  %s28_s5 = int_to_ptr.hbm [resolvable:$true] %s27_s5 }
  0x10   :  { %s1165_s15 = smov 256   ;;  %s1166_s16 = smov 16  }
  0x11   :  { %117 = dma.hbm_to_vmem [thread:$0]  %s110_s30, 1024, %s112_s12, [#allocation15], %s1165_s15, %s1165_s15, %s1166_s16  }
  0x12   :  { %s49_s19 = sshll.u32 %s1305_s2, 4  ;;  %s1167_s20 = smov [#allocation2]   ;;  %s50_s19 = int_to_ptr.hbm [resolvable:$true] %s49_s19 }
  0x13   :  { %s29_s21 = sshll.u32 %s1167_s20, 4  ;;  %s1168_s7 = smov [#allocation7]   ;;  %s30_s21 = int_to_ptr.vmem [resolvable:$true] %s29_s21 }
  0x14   :  { %32 = dma.hbm_to_vmem [thread:$0]  %s28_s5, 64, %s30_s21, [#allocation3]  }
  0x15   :  { %s51_s22 = sshll.u32 %s1168_s7, 4  ;;  %s70_s0 = sshll.u32 %s1307_s4, 4  ;;  %s52_s22 = int_to_ptr.vmem [resolvable:$true] %s51_s22  ;;  %s71_s0 = int_to_ptr.hbm [resolvable:$true] %s70_s0 }
  0x16   :  { %54 = dma.hbm_to_vmem [thread:$0]  %s50_s19, 128, %s52_s22, [#allocation6]  }
  0x17   :  { %s96_s26 = sshll.u32 %s1309_s6, 4  ;;  %s1169_s3 = smov [#allocation10]   ;;  %s97_s26 = int_to_ptr.hbm [resolvable:$true] %s96_s26 }
  0x18   :  { %s72_s2 = sshll.u32 %s1169_s3, 4  ;;  %s1170_s29 = smov [#allocation13]   ;;  %s73_s2 = int_to_ptr.vmem [resolvable:$true] %s72_s2 }
  0x19   :  { %78 = dma.hbm_to_vmem [thread:$0]  %s71_s0, 256, %s73_s2, [#allocation9], %s1162_s27, %s1162_s27, %s1163_s28  }
  0x1a   :  { %s98_s30 = sshll.u32 %s1170_s29, 4  ;;  %s122_s4 = sshll.u32 %s1311_s8, 4  ;;  %s99_s30 = int_to_ptr.vmem [resolvable:$true] %s98_s30  ;;  %s123_s4 = int_to_ptr.hbm [resolvable:$true] %s122_s4 }
  0x1b   :  { %104 = dma.hbm_to_vmem [thread:$0]  %s97_s26, 1024, %s99_s30, [#allocation12], %s1165_s15, %s1165_s15, %s1166_s16  }
  0x1c   :  { %s135_s6 = sshll.u32 %s1312_s9, 4  ;;  %s1171_s5 = smov [#allocation16]   ;;  %s136_s6 = int_to_ptr.hbm [resolvable:$true] %s135_s6 }
  0x1d   :  { %s124_s17 = sshll.u32 %s1171_s5, 4  ;;  %s1172_s18 = smov [#allocation17]   ;;  %s125_s17 = int_to_ptr.vmem [resolvable:$true] %s124_s17 }
  0x1e   :  { %130 = dma.hbm_to_vmem [thread:$0]  %s123_s4, 256, %s125_s17, [#allocation15], %s1162_s27, %s1162_s27, %s1163_s28  }
  0x1f   :  { %s137_s19 = sshll.u32 %s1172_s18, 4  ;;  %s138_s19 = int_to_ptr.vmem [resolvable:$true] %s137_s19 }
  0x20   :  { %143 = dma.hbm_to_vmem [thread:$0]  %s136_s6, 512, %s138_s19, [#allocation18], %s1162_s27, %s1162_s27, %s1163_s28  }
  0x21   :  { %1145 = dma.done.wait [#allocation3], 64  }
  0x22   :  { %1146 = vsyncadd [#allocation3], 4294967232 }
  0x23   :  { %1147 = dma.done.wait [#allocation6], 192  }
  0x24   :  { %1148 = vsyncadd [#allocation6], 4294967104 }
  0x25   :  { %1149 = dma.done.wait [#allocation9], 448  }
  0x26   :  { %1150 = vsyncadd [#allocation9], 4294966848 }
  0x27   :  { %1151 = dma.done.wait [#allocation12], 1280  }
  0x28   :  { %1152 = vsyncadd [#allocation12], 4294966016 }
  0x29   :  { %1153 = dma.done.wait [#allocation15], 1280  }
  0x2a   :  { %1154 = vsyncadd [#allocation15], 4294966016 }
  0x2b   :  { %1155 = dma.done.wait [#allocation18], 512  }
  0x2c   :  { %1156 = vsyncadd [#allocation18], 4294966784  ;;  %vm189_vm0 = vcmask 261120   ;;  %v185_v0 = vld [vmem:[#allocation2] sm:$0xf]  ;;  %v1173_v3 = vmov 32.0  }
  0x2d   :  { %v186_v1 = vunpack.c.l.bf16 %v185_v0  ;;  %865 = vrcp.f32 %v1173_v3  ;;  %v815_v15 = vld [vmem:[#allocation10 + $0x8] sm:$0xff]  ;;  %v814_v16 = vld [vmem:[#allocation10] sm:$0xff]  ;;  %v857_v26 = vld [vmem:[#allocation8] ss:$0 sm:$0xff]  ;;  %s1174_s8 = smov 32   ;;  %vm674_vm8 = vcmask 523520  }
  0x2e   :  { %257 = vmatpush.bf16.msra.mxu0 %v815_v15  ;;  %v858_v29 = vld [vmem:[#allocation8 + $0x1] ss:$0 sm:$0xff]  ;;  %v817_v33 = vld [vmem:[#allocation11 + $0x8] sm:$0xff]  ;;  %v859_v35 = vld [vmem:[#allocation8 + $0x2] ss:$0 sm:$0xff]  ;;  %vm651_vm9 = vcmask 523264  }
  0x2f   :  { %v190_v2 = vsel %vm189_vm0, %v186_v1, 0.0  ;;  %295 = vmatpush.bf16.msra.mxu1 %v817_v33  ;;  %v816_v34 = vld [vmem:[#allocation11] sm:$0xff]  ;;  %v734_v47 = vld [vmem:[#allocation14 + $0x20] sm:$0xf]  ;;  %v830_v49 = vld [vmem:[#allocation14 + $0x24] sm:$0xf] }
  0x30   :  { %191 = vadd.xlane.f32.xlu0 %v190_v2  ;;  %v860_v41 = vld [vmem:[#allocation8 + $0x3] ss:$0 sm:$0xff]  ;;  %v832_v48 = vld [vmem:[#allocation14 + $0x2c] sm:$0xf0]  ;;  %v718_v58 = vld [vmem:[#allocation14] sm:$0xf] }
  0x31   :  { %v735_v50 = vor.u32 %v832_v48, %v734_v47  ;;  %v736_v51 = vld [vmem:[#allocation14 + $0x30] sm:$0xf0]  ;;  %v828_v59 = vld [vmem:[#allocation14 + $0xc] sm:$0xf0]  ;;  %v826_v60 = vld [vmem:[#allocation14 + $0x4] sm:$0xf] }
  0x32   :  { %258 = vmatpush.bf16.msra.mxu0 %v814_v16  ;;  %v739_v52 = vor.u32 %v830_v49, %v736_v51  ;;  %v719_v61 = vor.u32 %v828_v59, %v718_v58  ;;  %v720_v62 = vld [vmem:[#allocation14 + $0x10] sm:$0xf0]  ;;  %v742_v0 = vld [vmem:[#allocation14 + $0x28] sm:$0xf]  ;;  %v831_v2 = vld [vmem:[#allocation14 + $0x2c] sm:$0xf] }
  0x33   :  { %v866_v4 = vpop.eup %865  ;;  %296 = vmatpush.bf16.msra.mxu1 %v816_v34  ;;  %403 = vmatpush.bf16.msra.mxu2 %v735_v50  ;;  %v723_v63 = vor.u32 %v826_v60, %v720_v62  ;;  %v335_v3 = vld [vmem:[#allocation5] sm:$0xf]  ;;  %v824_v15 = vld [vmem:[#allocation13 + $0x2c] sm:$0xf0]  ;;  %v822_v16 = vld [vmem:[#allocation13 + $0x24] sm:$0xf] }
  0x34   :  { %v194_v5 = vmul.f32 32.0, %v866_v4  ;;  %vm198_vm1 = vweird.f32 %v866_v4  ;;  %416 = vmatpush.bf16.msra.mxu3 %v739_v52  ;;  %v821_v33 = vld [vmem:[#allocation13 + $0x14] sm:$0xf0]  ;;  %v819_v34 = vld [vmem:[#allocation13 + $0xc] sm:$0xf]  ;;  %s1175_s9 = smov [#allocation19]  }
  0x35   :  { %v861_v47 = vld [vmem:[#allocation8 + $0x4] ss:$0 sm:$0xff]  ;;  %v862_v50 = vld [vmem:[#allocation8 + $0x5] ss:$0 sm:$0xff]  ;;  %s681_s27 = sshll.u32 %s1175_s9, 4  ;;  %s683_s16 = sshll.u32 %s1313_s10, 4  ;;  %s682_s27 = int_to_ptr.vmem [resolvable:$true] %s681_s27  ;;  %s684_s16 = int_to_ptr.hbm [resolvable:$true] %s683_s16 }
  0x36   :  { %v195_v6 = vsub.f32 1.0, %v194_v5  ;;  %v744_v5 = vld [vmem:[#allocation14 + $0x38] sm:$0xf0] }
  0x37   :  { %404 = vmatpush.bf16.msra.mxu2 %v719_v61  ;;  %v835_v61 = vld [vmem:[#allocation16 + $0x8] sm:$0xff] }
  0x38   :  { %v196_v7 = vmul.f32 %v866_v4, %v195_v6  ;;  %417 = vmatpush.bf16.msra.mxu3 %v723_v63  ;;  %v747_v6 = vor.u32 %v831_v2, %v744_v5 }
  0x3a   :  { %v197_v8 = vadd.f32 %v866_v4, %v196_v7  ;;  %748 = vmatmul.msk.bf16.vlgmr.msra.gmra.mxu2 %vm189_vm0, %v335_v3  ;;  %442 = vmatpush.bf16.msrb.mxu1 %v747_v6  ;;  %v726_v7 = vld [vmem:[#allocation14 + $0x8] sm:$0xf] }
  0x3b   :  { %749 = vmatmul.msk.bf16.vlgmr.msra.gmra.mxu3 %vm189_vm0, %v335_v3 }
  0x3c   :  { %v1274_v9 = vsel %vm198_vm1, %v866_v4, %v197_v8  ;;  %v829_v8 = vld [vmem:[#allocation14 + $0x14] sm:$0xf0] }
  0xa3   :  { %v192_v10 = vpop.xlane.xlu0 %191 }
  0xa4   :  { %v200_v11 = vmul.f32 %v1274_v9, %v192_v10  ;;  %v827_v10 = vld [vmem:[#allocation14 + $0xc] sm:$0xf] }
  0xa6   :  { %v201_v12 = vsub.f32 %v186_v1, %v200_v11  ;;  %v727_v11 = vor.u32 %v829_v8, %v726_v7 }
  0xa8   :  { %v202_v13 = vmul.f32 %v201_v12, %v201_v12 }
  0xaa   :  { %v203_v14 = vsel %vm189_vm0, %v202_v13, 0.0 }
  0xab   :  { %204 = vadd.xlane.f32.xlu0 %v203_v14  ;;  %v770_v14 = vld [vmem:[#allocation13 + $0x20] sm:$0xf] }
 0x11e   :  { %v205_v17 = vpop.xlane.xlu0 %204 }
 0x11f   :  { %v206_v18 = vmul.f32 %v205_v17, %v1274_v9  ;;  %v771_v17 = vor.u32 %v824_v15, %v770_v14 }
 0x121   :  { %v207_v19 = vadd.f32 1e-05, %v206_v18  ;;  %v772_v18 = vld [vmem:[#allocation13 + $0x30] sm:$0xf0]  ;;  %498 = vmatpush.bf16.msrb.mxu2 %v771_v17 }
 0x123   :  { %867 = vrsqrt.f32 %v207_v19  ;;  %vm214_vm3 = vweird.f32 %v207_v19 }
 0x129   :  { %v868_v20 = vpop.eup %867 }
 0x12a   :  { %v209_v21 = vmul.f32 %v868_v20, %v207_v19  ;;  %vm215_vm2 = vweird.f32 %v868_v20  ;;  %v778_v19 = vld [vmem:[#allocation13 + $0x28] sm:$0xf] }
 0x12b   :  { %vm216_vm4 = vmor %vm214_vm3, %vm215_vm2 }
 0x12c   :  { %v210_v22 = vmul.f32 %v868_v20, %v209_v21  ;;  %v775_v21 = vor.u32 %v822_v16, %v772_v18 }
 0x12e   :  { %v211_v23 = vmul.f32 0.5, %v210_v22  ;;  %v754_v22 = vld [vmem:[#allocation13] sm:$0xf]  ;;  %511 = vmatpush.bf16.msrb.mxu3 %v775_v21 }
 0x130   :  { %v212_v24 = vsub.f32 1.5, %v211_v23  ;;  %v820_v23 = vld [vmem:[#allocation13 + $0xc] sm:$0xf0] }
 0x132   :  { %v213_v25 = vmul.f32 %v868_v20, %v212_v24  ;;  %v818_v24 = vld [vmem:[#allocation13 + $0x4] sm:$0xf] }
 0x134   :  { %v217_v27 = vsel %vm216_vm4, %v868_v20, %v213_v25  ;;  %v825_v20 = vld [vmem:[#allocation13 + $0x34] sm:$0xf0] }
 0x135   :  { %v218_v28 = vmul.f32 %v217_v27, %v201_v12  ;;  %v728_v12 = vld [vmem:[#allocation14 + $0x18] sm:$0xf0]  ;;  %v779_v25 = vor.u32 %v825_v20, %v778_v19  ;;  %v756_v27 = vld [vmem:[#allocation13 + $0x10] sm:$0xf0] }
 0x136   :  { %v731_v13 = vor.u32 %v827_v10, %v728_v12 }
 0x137   :  { %v222_v30 = vmul.f32 %v857_v26, %v218_v28  ;;  %v755_v26 = vor.u32 %v820_v23, %v754_v22  ;;  %v823_v28 = vld [vmem:[#allocation13 + $0x2c] sm:$0xf] }
 0x138   :  { %443 = vmatpush.bf16.msrb.mxu1 %v731_v13 }
 0x139   :  { %v226_v31 = vadd.f32 %v858_v29, %v222_v30  ;;  %v780_v29 = vld [vmem:[#allocation13 + $0x38] sm:$0xf0]  ;;  %v759_v30 = vor.u32 %v818_v24, %v756_v27  ;;  %499 = vmatpush.bf16.msrb.mxu2 %v755_v26 }
 0x13b   :  { %v231_v32 = vpack.c.bf16 %v226_v31, %v226_v31  ;;  %v783_v31 = vor.u32 %v823_v28, %v780_v29  ;;  %512 = vmatpush.bf16.msrb.mxu3 %v759_v30  ;;  %v336_v28 = vld [vmem:[#allocation7] sm:$0xff] }
 0x13d   :  { %706 = vmatmul.msk.bf16.vlgmr.msra.gmra.mxu0 %vm189_vm0, %v231_v32  ;;  %v762_v32 = vld [vmem:[#allocation13 + $0x8] sm:$0xf]  ;;  %606 = vmatpush.bf16.msra.mxu2 %v835_v61 }
 0x1ba   :  { %v260_v36 = vpop.f32.mrf.mxu0 }
 0x1bb   :  { %v261_v37 = vadd.f32 %v859_v35, %v260_v36  ;;  %v763_v35 = vor.u32 %v821_v33, %v762_v32  ;;  %v764_v36 = vld [vmem:[#allocation13 + $0x18] sm:$0xf0] }
 0x1bd   :  { %v264_v38 = vmax.f32 %v261_v37, 0.0  ;;  %v767_v37 = vor.u32 %v819_v34, %v764_v36 }
 0x1bf   :  { %v269_v39 = vpack.c.bf16 %v264_v38, %v264_v38 }
 0x1c1   :  { %715 = vmatmul.msk.bf16.vlgmr.msra.gmra.mxu1 %vm189_vm0, %v269_v39 }
 0x1c2   :  { %v262_v40 = vpop.f32.mrf.mxu0  ;;  %537 = vmatpush.bf16.msra.mxu1 %v783_v31 }
 0x1c6   :  { %538 = vmatpush.bf16.msra.mxu1 %v767_v37 }
 0x1d1   :  { %751 = vmatmul.msk.bf16.vlgmr.msrb.gmra.mxu1 %vm189_vm0, %v335_v3 }
 0x23e   :  { %v298_v42 = vpop.f32.mrf.mxu1 }
 0x23f   :  { %v299_v43 = vadd.f32 %v860_v41, %v298_v42 }
 0x241   :  { %v302_v44 = vadd.f32 %v299_v43, %v186_v1  ;;  %v833_v1 = vld [vmem:[#allocation14 + $0x34] sm:$0xf0] }
 0x242   :  { %v743_v4 = vor.u32 %v833_v1, %v742_v0  ;;  %v834_v0 = vld [vmem:[#allocation16] sm:$0xff]  ;;  %v544_v1 = vld [vmem:[#allocation8 + $0x6] sm:$0xf] }
 0x243   :  { %v305_v45 = vsel %vm189_vm0, %v302_v44, 0.0  ;;  %v546_v2 = vperm.slane %v544_v1, 0  ;;  %607 = vmatpush.bf16.msra.mxu2 %v834_v0  ;;  %v548_v8 = vperm.slane %v544_v1, 2  ;;  %v549_v10 = vperm.slane %v544_v1, 3 }
 0x244   :  { %306 = vadd.xlane.f32.xlu1 %v305_v45  ;;  %429 = vmatpush.bf16.msrb.mxu0 %v743_v4 }
 0x246   :  { %v300_v46 = vpop.f32.mrf.mxu1 }
 0x248   :  { %430 = vmatpush.bf16.msrb.mxu0 %v727_v11 }
 0x24b   :  { %750 = vmatmul.msk.bf16.vlgmr.msrb.gmra.mxu0 %vm189_vm0, %v335_v3  ;;  %v547_v3 = vperm.slane %v544_v1, 1 }
 0x24c   :  { %524 = vmatpush.bf16.msra.mxu0 %v779_v25 }
 0x250   :  { %525 = vmatpush.bf16.msra.mxu0 %v763_v35 }
 0x2b7   :  { %v307_v53 = vpop.xlane.xlu1 %306 }
 0x2b8   :  { %v308_v54 = vmul.f32 %v307_v53, %v1274_v9 }
 0x2ba   :  { %v1283_v55 = vsub.f32 %v302_v44, %v308_v54  ;;  %v419_v54 = vpop.f32.mrf.mxu3 }
 0x2bc   :  { %v310_v56 = vmul.f32 %v1283_v55, %v1283_v55 }
 0x2be   :  { %v311_v57 = vsel %vm189_vm0, %v310_v56, 0.0 }
 0x2bf   :  { %312 = vadd.xlane.f32.xlu1 %v311_v57  ;;  %v445_v57 = vpop.f32.mrf.mxu1 }
 0x2c2   :  { %v421_v59 = vpop.f32.mrf.mxu3 }
 0x2c8   :  { %v432_v56 = vpop.f32.mrf.mxu0 }
 0x2d0   :  { %v434_v60 = vpop.f32.mrf.mxu0 }
 0x332   :  { %v313_v38 = vpop.xlane.xlu1 %312 }
 0x333   :  { %v314_v39 = vmul.f32 %v313_v38, %v1274_v9  ;;  %v406_v9 = vpop.f32.mrf.mxu2 }
 0x335   :  { %v315_v40 = vadd.f32 1e-05, %v314_v39 }
 0x337   :  { %869 = vrsqrt.f32 %v315_v40  ;;  %vm322_vm6 = vweird.f32 %v315_v40 }
 0x33b   :  { %v408_v58 = vpop.f32.mrf.mxu2 }
 0x33d   :  { %v870_v41 = vpop.eup %869 }
 0x33e   :  { %v317_v42 = vmul.f32 %v870_v41, %v315_v40  ;;  %vm323_vm5 = vweird.f32 %v870_v41 }
 0x33f   :  { %vm324_vm7 = vmor %vm322_vm6, %vm323_vm5 }
 0x340   :  { %v318_v43 = vmul.f32 %v870_v41, %v317_v42  ;;  %v838_v42 = vld [vmem:[#allocation17 + $0x10] sm:$0xff] }
 0x342   :  { %v319_v44 = vmul.f32 0.5, %v318_v43  ;;  %v837_v43 = vld [vmem:[#allocation17 + $0x8] sm:$0xff] }
 0x344   :  { %v320_v45 = vsub.f32 1.5, %v319_v44 }
 0x346   :  { %v321_v46 = vmul.f32 %v870_v41, %v320_v45  ;;  %v836_v45 = vld [vmem:[#allocation17] sm:$0xff] }
 0x348   :  { %v325_v48 = vsel %vm324_vm7, %v870_v41, %v321_v46  ;;  %v839_v41 = vld [vmem:[#allocation17 + $0x18] sm:$0xff]  ;;  %v863_v46 = vld [vmem:[#allocation8 + $0xa] ss:$0 sm:$0xff] }
 0x349   :  { %v326_v49 = vmul.f32 %v325_v48, %v1283_v55  ;;  %v447_v55 = vpop.f32.mrf.mxu1  ;;  %659 = vmatpush.bf16.msra.mxu3 %v839_v41 }
 0x34b   :  { %v330_v51 = vmul.f32 %v861_v47, %v326_v49 }
 0x34d   :  { %v334_v52 = vadd.f32 %v862_v50, %v330_v51  ;;  %660 = vmatpush.bf16.msra.mxu3 %v838_v42 }
 0x34f   :  { %v345_v53 = vpack.c.bf16 %v334_v52, %v334_v52  ;;  %v864_v52 = vld [vmem:[#allocation8 + $0xb] ss:$0 sm:$0xff] }
 0x351   :  { %784 = vmatmul.msk.bf16.vlgmr.msrb.gmra.mxu2 %vm189_vm0, %v345_v53  ;;  %785 = vmatmul.msk.bf16.vlgmr.msrb.gmra.mxu3 %vm189_vm0, %v345_v53 }
 0x352   :  { %786 = vmatmul.msk.bf16.vlgmr.msra.gmra.mxu0 %vm189_vm0, %v345_v53  ;;  %787 = vmatmul.msk.bf16.vlgmr.msra.gmra.mxu1 %vm189_vm0, %v345_v53 }
 0x353   :  { %661 = vmatpush.bf16.msra.mxu3 %v837_v43 }
 0x357   :  { %662 = vmatpush.bf16.msra.mxu3 %v836_v45 }
 0x3cf   :  { %v527_v62 = vpop.f32.mrf.mxu0  ;;  %v540_v63 = vpop.f32.mrf.mxu1 }
 0x3d0   :  { %v528_v11 = vadd.f32 %v527_v62, %v432_v56  ;;  %v541_v12 = vadd.f32 %v540_v63, %v445_v57 }
 0x3d2   :  { %v556_v19 = vadd.f32 %v548_v8, %v528_v11  ;;  %v557_v20 = vadd.f32 %v549_v10, %v541_v12 }
 0x3d4   :  { %v501_v4 = vpop.f32.mrf.mxu2  ;;  %v514_v5 = vpop.f32.mrf.mxu3  ;;  %v567_v23 = vmul.f32 0.5, %v557_v20 }
 0x3d5   :  { %v502_v6 = vadd.f32 %v501_v4, %v406_v9  ;;  %v515_v7 = vadd.f32 %v514_v5, %v419_v54 }
 0x3d7   :  { %v554_v13 = vadd.f32 %v546_v2, %v502_v6  ;;  %v555_v14 = vadd.f32 %v547_v3, %v515_v7  ;;  %v529_v15 = vpop.f32.mrf.mxu0  ;;  %v542_v16 = vpop.f32.mrf.mxu1 }
 0x3d9   :  { %v558_v17 = vmul.f32 0.5, %v554_v13  ;;  %v562_v18 = vmul.f32 0.5, %v555_v14 }
 0x3db   :  { %871 = vtanh.f32 %v558_v17 }
 0x3dc   :  { %873 = vtanh.f32 %v562_v18  ;;  %v503_v21 = vpop.f32.mrf.mxu2  ;;  %v516_v22 = vpop.f32.mrf.mxu3 }
 0x3dd   :  { %875 = vtanh.f32 %v556_v19 }
 0x3de   :  { %877 = vtanh.f32 %v567_v23 }
 0x3e1   :  { %v872_v24 = vpop.eup %871 }
 0x3e2   :  { %v874_v25 = vpop.eup %873  ;;  %v560_v26 = vmul.f32 0.5, %v872_v24 }
 0x3e3   :  { %v564_v27 = vmul.f32 0.5, %v874_v25  ;;  %v876_v30 = vpop.eup %875 }
 0x3e4   :  { %v561_v29 = vadd.f32 0.5, %v560_v26  ;;  %v878_v34 = vpop.eup %877 }
 0x3e5   :  { %v565_v31 = vadd.f32 0.5, %v564_v27  ;;  %v569_v36 = vmul.f32 0.5, %v878_v34 }
 0x3e6   :  { %v572_v32 = vmul.f32 %v876_v30, %v561_v29 }
 0x3e7   :  { %v571_v33 = vmul.f32 %v565_v31, %v336_v28  ;;  %v570_v37 = vadd.f32 0.5, %v569_v36 }
 0x3e9   :  { %v573_v35 = vadd.f32 %v572_v32, %v571_v33 }
 0x3eb   :  { %671 = vrot.lane.b32.xlu2 %v573_v35, %s1174_s8  ;;  %879 = vtanh.f32 %v573_v35 }
 0x3f1   :  { %v880_v38 = vpop.eup %879 }
 0x3f2   :  { %v575_v39 = vmul.f32 %v880_v38, %v570_v37 }
 0x3f4   :  { %669 = vst.msk [vmem:[#allocation19 + $0x8] sm:$0xff] %vm189_vm0, %v575_v39  ;;  %v580_v40 = vpack.c.bf16 %v575_v39, %v575_v39 }
 0x3f6   :  { %796 = vmatmul.msk.bf16.vlgmr.msra.gmra.mxu2 %vm189_vm0, %v580_v40 }
 0x445   :  { %v672_v44 = vpop.permute.xlu2 %671 }
 0x446   :  { %675 = vst.msk [vmem:[#allocation19 + $0x8] sm:$0xff] %vm674_vm8, %v672_v44 }
 0x479   :  { %v609_v47 = vpop.f32.mrf.mxu2 }
 0x47a   :  { %v610_v48 = vadd.f32 %v863_v46, %v609_v47 }
 0x47c   :  { %v613_v49 = vmax.f32 %v610_v48, 0.0 }
 0x47e   :  { %v622_v50 = vpack.c.bf16 %v613_v49, %v613_v49 }
 0x480   :  { %813 = vmatmul.msk.bf16.vlgmr.msra.gmra.mxu3 %vm651_vm9, %v622_v50 }
 0x481   :  { %v611_v51 = vpop.f32.mrf.mxu2 }
 0x503   :  { %v664_v53 = vpop.f32.mrf.mxu3 }
 0x504   :  { %v665_v9 = vadd.f32 %v864_v52, %v664_v53 }
 0x506   :  { %668 = vst [vmem:[#allocation19] sm:$0xff] %v665_v9 }
 0x507   :  { %686 = dma.vmem_to_hbm [thread:$0]  %s682_s27, 256, %s684_s16, [#allocation4]  }
 0x50b   :  { %v666_v54 = vpop.f32.mrf.mxu3 }
 0x50c   :  { %1157 = dma.done.wait [#allocation4], 256  }
 0x50d   :  { %1158 = vsyncadd [#allocation4], 4294967040 }
 0x50e   :  { %691 = vsyncpa [#allocation3], 1 }
 0x50f   :  { %692 = vsyncpa [#allocation6], 1 }
 0x510   :  { %693 = vsyncpa [#allocation9], 1 }
 0x511   :  { %694 = vsyncpa [#allocation12], 1 }
 0x512   :  { %695 = vsyncpa [#allocation15], 1 }
 0x513   :  { %696 = vsyncpa [#allocation18], 1 }
 0x514   :  { %697 = vsyncpa [#allocation4], 1 }

</bundles_post_ra>
